<compile_context>
chip_gen: v6e
topology: v6e:2x2x1
jax: 0.10.0
libtpu: 0.0.40
codegen_flags: <defaults>
</compile_context>

<pallas_src>
import jax
import jax.numpy as jnp
from jax.experimental import pallas as pl
from jax.experimental.pallas import tpu as pltpu

IN_FEATURES = 784
HIDDEN = 128
OUT_FEATURES = 1
LEAK = 0.2

_TILE_CANDIDATES = (1024, 512, 256, 128)


def discriminator_kernel(x_ref, w1_ref, b1_ref, w2_ref, b2_ref, w3_ref, b3_ref,
                         o_ref):
    # Fused 3-layer MLP for one batch tile per grid step. Activations stay f32
    # between layers; bf16 only as MXU operands, f32 accumulation.
    x = x_ref[...].astype(jnp.bfloat16)                              # (TM, 784)

    h1 = jnp.dot(x, w1_ref[...],
                 preferred_element_type=jnp.float32) + b1_ref[...]
    h1 = jnp.maximum(h1, LEAK * h1)                                  # LeakyReLU(0.2)

    h2 = jnp.dot(h1.astype(jnp.bfloat16), w2_ref[...],
                 preferred_element_type=jnp.float32) + b2_ref[...]
    h2 = jnp.maximum(h2, LEAK * h2)                                  # LeakyReLU(0.2)

    # Linear(128 -> 1): single output neuron -> elementwise mul + lane reduce
    # in f32. Keeps the stored output (TM, 1): no padded lanes, no wrapper slice.
    h3 = jnp.sum(h2 * w3_ref[...], axis=-1, keepdims=True) + b3_ref[...]

    # Sigmoid: exp on the EUP, divide via approx reciprocal (also EUP slot).
    o_ref[...] = pl.reciprocal(1.0 + jnp.exp(-h3), approx=True).astype(o_ref.dtype)


def prepare_params(w1_oi, b1, w2_oi, b2, w3_oi, b3):
    """One-time weight prep (outside the hot path):
       - transpose PyTorch (out, in) -> (in, out) so the kernel does x @ W
       - cast the two big weights to bf16 (halved HBM traffic, native MXU path)
       - final layer kept as an f32 (1, 128) row + (1, 1) bias (reduce path)
       - biases stay f32, reshaped to (1, N) rows for broadcast in VMEM."""
    w1 = jnp.asarray(w1_oi, jnp.float32).T.astype(jnp.bfloat16)    # (784, 128)
    w2 = jnp.asarray(w2_oi, jnp.float32).T.astype(jnp.bfloat16)    # (128, 128)
    w3 = jnp.asarray(w3_oi, jnp.float32).reshape(1, HIDDEN)        # (1, 128) f32
    b1p = jnp.asarray(b1, jnp.float32).reshape(1, HIDDEN)
    b2p = jnp.asarray(b2, jnp.float32).reshape(1, HIDDEN)
    b3p = jnp.asarray(b3, jnp.float32).reshape(1, 1)
    return (w1, b1p, w2, b2p, w3, b3p)


def _is_dual_tensorcore_chip():
    # v7x has 2 TensorCores per chip; elsewhere (v5e/v6e) there is 1.
    try:
        kind = jax.devices()[0].device_kind.lower()
    except Exception:
        return False
    return ("v7" in kind) or ("7x" in kind)


def _choose_block_m(batch, dual_tc):
    """Batch tile. HBM-bound kernel -> biggest tile that divides B (amortizes
    ~0.35us/step). On dual-TC chips (v7x) guarantee >=2 grid steps so the
    'parallel' grid axis can shard across both TensorCores."""
    if dual_tc and batch >= 16:
        for tm in _TILE_CANDIDATES + (64, 32, 16, 8):
            if batch % tm == 0 and batch // tm >= 2:
                return tm
        half = (batch // 2) // 8 * 8
        if half >= 8 and batch % half == 0:
            return half
        return batch
    for tm in _TILE_CANDIDATES:
        if batch >= 2 * tm and batch % tm == 0:
            return tm
    return batch


def discriminator_forward(x, params):
    """x: (B, 784), float32 or bfloat16 (flattened images).
       params: from prepare_params()."""
    w1, b1, w2, b2, w3, b3 = params
    B = x.shape[0]
    tm = _choose_block_m(B, _is_dual_tensorcore_chip())
    grid = (B // tm,)

    x_item = jnp.dtype(x.dtype).itemsize
    flops = 2 * B * (IN_FEATURES * HIDDEN + HIDDEN * HIDDEN) + 2 * B * HIDDEN
    bytes_accessed = (x.size * x_item
                      + B * OUT_FEATURES * 4
                      + (w1.size + w2.size) * 2
                      + (b1.size + b2.size + w3.size + b3.size) * 4)
    cost = pl.CostEstimate(flops=int(flops), transcendentals=int(2 * B),
                           bytes_accessed=int(bytes_accessed))

    # Scoped-VMEM estimate: double-buffered x/out tiles + resident weights
    # + in-kernel temporaries. Only raise the limit if we approach v5e's
    # 16 MiB scoped default (v6e/v7x defaults are 32 MiB).
    vmem_est = (2 * tm * IN_FEATURES * x_item            # x tiles (double buffer)
                + 2 * tm * OUT_FEATURES * 4              # out tiles
                + (w1.size + w2.size) * 2                # bf16 weights (resident)
                + tm * IN_FEATURES * 2                   # x bf16 temp
                + 2 * tm * HIDDEN * 4                    # h1 / h2 temps
                + (1 << 20))                             # headroom
    cp_kwargs = dict(dimension_semantics=("parallel",))
    if vmem_est > (12 << 20):
        cp_kwargs["vmem_limit_bytes"] = int(min(vmem_est * 5 // 4, 48 << 20))

    return pl.pallas_call(
        discriminator_kernel,
        out_shape=jax.ShapeDtypeStruct((B, OUT_FEATURES), jnp.float32),
        grid=grid,
        in_specs=[
            pl.BlockSpec((tm, IN_FEATURES), lambda i: (i, 0)),      # x tile
            pl.BlockSpec((IN_FEATURES, HIDDEN), lambda i: (0, 0)),  # w1 (resident)
            pl.BlockSpec((1, HIDDEN), lambda i: (0, 0)),            # b1
            pl.BlockSpec((HIDDEN, HIDDEN), lambda i: (0, 0)),       # w2 (resident)
            pl.BlockSpec((1, HIDDEN), lambda i: (0, 0)),            # b2
            pl.BlockSpec((1, HIDDEN), lambda i: (0, 0)),            # w3 row (f32)
            pl.BlockSpec((1, 1), lambda i: (0, 0)),                 # b3
        ],
        out_specs=pl.BlockSpec((tm, OUT_FEATURES), lambda i: (i, 0)),
        compiler_params=pltpu.CompilerParams(**cp_kwargs),
        cost_estimate=cost,
    )(x, w1, b1, w2, b2, w3, b3)


def reference_forward(x, w1_oi, b1, w2_oi, b2, w3_oi, b3):
    h = x @ w1_oi.T + b1
    h = jnp.where(h > 0, h, LEAK * h)
    h = h @ w2_oi.T + b2
    h = jnp.where(h > 0, h, LEAK * h)
    h = h @ w3_oi.T + b3
    return 1.0 / (1.0 + jnp.exp(-h))


def _init_linear(key, out_f, in_f):
    # PyTorch nn.Linear default init: U(-1/sqrt(in), 1/sqrt(in)) for W and b.
    kw, kb = jax.random.split(key)
    bound = 1.0 / jnp.sqrt(jnp.float32(in_f))
    w = jax.random.uniform(kw, (out_f, in_f), jnp.float32, -bound, bound)
    b = jax.random.uniform(kb, (out_f,), jnp.float32, -bound, bound)
    return w, b


if __name__ == "__main__":
    key = jax.random.PRNGKey(0)
    k_x, k1, k2, k3, k_big = jax.random.split(key, 5)

    w1, b1 = _init_linear(k1, HIDDEN, IN_FEATURES)    # Linear(784, 128)
    w2, b2 = _init_linear(k2, HIDDEN, HIDDEN)         # Linear(128, 128)
    w3, b3 = _init_linear(k3, OUT_FEATURES, HIDDEN)   # Linear(128, 1)

    # Weight prep happens exactly once, outside the forward hot path.
    params = prepare_params(w1, b1, w2, b2, w3, b3)

    # Small batch: single grid step on 1-TC chips (2 steps on v7x only if B>=16).
    B = 8
    x = jax.random.normal(k_x, (B, IN_FEATURES), jnp.float32)
    out = jax.block_until_ready(discriminator_forward(x, params))
    ref = reference_forward(x, w1, b1, w2, b2, w3, b3)
    assert out.shape == (B, OUT_FEATURES), out.shape
    assert jnp.allclose(out, ref, atol=2e-2, rtol=2e-2), \
        f"small-batch mismatch, max err {jnp.max(jnp.abs(out - ref))}"

    # Larger batch exercises the batch-tiled ("parallel") grid path.
    Bb = 256
    xb = jax.random.normal(k_big, (Bb, IN_FEATURES), jnp.float32)
    outb = jax.block_until_ready(discriminator_forward(xb, params))
    refb = reference_forward(xb, w1, b1, w2, b2, w3, b3)
    assert outb.shape == (Bb, OUT_FEATURES), outb.shape
    assert jnp.allclose(outb, refb, atol=2e-2, rtol=2e-2), \
        f"tiled-batch mismatch, max err {jnp.max(jnp.abs(outb - refb))}"

    # Native-bf16 activation path (producer hands bf16; no wrapper pre-cast,
    # halves the dominant x HBM read).
    xh = xb.astype(jnp.bfloat16)
    outh = jax.block_until_ready(discriminator_forward(xh, params))
    refh = reference_forward(xh.astype(jnp.float32), w1, b1, w2, b2, w3, b3)
    assert outh.shape == (Bb, OUT_FEATURES), outh.shape
    assert jnp.allclose(outh, refh, atol=3e-2, rtol=3e-2), \
        f"bf16-input mismatch, max err {jnp.max(jnp.abs(outh - refh))}"

    print("KERNEL_OK")
</pallas_src>

<mosaic_0001>
module attributes {stable_mosaic.version = 11 : i64} {
  func.func @discriminator_kernel(%arg0: i32, %arg1: memref<8x784xf32, #tpu.memory_space<vmem>>, %arg2: memref<784x128xbf16, #tpu.memory_space<vmem>>, %arg3: memref<1x128xf32, #tpu.memory_space<vmem>>, %arg4: memref<128x128xbf16, #tpu.memory_space<vmem>>, %arg5: memref<1x128xf32, #tpu.memory_space<vmem>>, %arg6: memref<1x128xf32, #tpu.memory_space<vmem>>, %arg7: memref<1x1xf32, #tpu.memory_space<vmem>>, %arg8: memref<8x1xf32, #tpu.memory_space<vmem>>) attributes {dimension_semantics = [#tpu.dimension_semantics<parallel>], iteration_bounds = array<i64: 1>, scalar_prefetch = 0 : i64, scratch_operands = 0 : i64, tpu.core_type = #tpu.core_type<tc>, window_params = [{transform_indices = @transform_0, window_bounds = array<i64: 8, 784>}, {pipeline_mode = #tpu.pipeline_mode<synchronous>, transform_indices = @transform_1, window_bounds = array<i64: 784, 128>}, {pipeline_mode = #tpu.pipeline_mode<synchronous>, transform_indices = @transform_2, window_bounds = array<i64: 1, 128>}, {pipeline_mode = #tpu.pipeline_mode<synchronous>, transform_indices = @transform_3, window_bounds = array<i64: 128, 128>}, {pipeline_mode = #tpu.pipeline_mode<synchronous>, transform_indices = @transform_4, window_bounds = array<i64: 1, 128>}, {pipeline_mode = #tpu.pipeline_mode<synchronous>, transform_indices = @transform_5, window_bounds = array<i64: 1, 128>}, {pipeline_mode = #tpu.pipeline_mode<synchronous>, transform_indices = @transform_6, window_bounds = array<i64: 1, 1>}, {transform_indices = @transform_7, window_bounds = array<i64: 8, 1>}]} {
    %c0 = arith.constant 0 : index
    %c0_0 = arith.constant 0 : index
    %0 = vector.load %arg1[%c0, %c0_0] : memref<8x784xf32, #tpu.memory_space<vmem>>, vector<8x784xf32>
    %1 = arith.truncf %0 : vector<8x784xf32> to vector<8x784xbf16>
    %c0_1 = arith.constant 0 : index
    %c0_2 = arith.constant 0 : index
    %2 = vector.load %arg2[%c0_1, %c0_2] : memref<784x128xbf16, #tpu.memory_space<vmem>>, vector<784x128xbf16>
    %cst = arith.constant dense<0.000000e+00> : vector<8x128xf32>
    %3 = tpu.matmul %1, %2, %cst {dimension_numbers = #tpu.dot_dimension_numbers<[1], [0], [0], [1], [0, 0, 1, 1], [], []>} : vector<8x784xbf16>, vector<784x128xbf16>, vector<8x128xf32> -> vector<8x128xf32>
    %c0_3 = arith.constant 0 : index
    %c0_4 = arith.constant 0 : index
    %4 = vector.load %arg3[%c0_3, %c0_4] : memref<1x128xf32, #tpu.memory_space<vmem>>, vector<1x128xf32>
    %5 = vector.broadcast %4 : vector<1x128xf32> to vector<8x128xf32>
    %6 = arith.addf %3, %5 : vector<8x128xf32>
    %cst_5 = arith.constant 2.000000e-01 : f32
    %7 = vector.broadcast %cst_5 : f32 to vector<8x128xf32>
    %8 = arith.mulf %7, %6 : vector<8x128xf32>
    %9 = arith.maximumf %6, %8 : vector<8x128xf32>
    %10 = arith.truncf %9 : vector<8x128xf32> to vector<8x128xbf16>
    %c0_6 = arith.constant 0 : index
    %c0_7 = arith.constant 0 : index
    %11 = vector.load %arg4[%c0_6, %c0_7] : memref<128x128xbf16, #tpu.memory_space<vmem>>, vector<128x128xbf16>
    %cst_8 = arith.constant dense<0.000000e+00> : vector<8x128xf32>
    %12 = tpu.matmul %10, %11, %cst_8 {dimension_numbers = #tpu.dot_dimension_numbers<[1], [0], [0], [1], [0, 0, 1, 1], [], []>} : vector<8x128xbf16>, vector<128x128xbf16>, vector<8x128xf32> -> vector<8x128xf32>
    %c0_9 = arith.constant 0 : index
    %c0_10 = arith.constant 0 : index
    %13 = vector.load %arg5[%c0_9, %c0_10] : memref<1x128xf32, #tpu.memory_space<vmem>>, vector<1x128xf32>
    %14 = vector.broadcast %13 : vector<1x128xf32> to vector<8x128xf32>
    %15 = arith.addf %12, %14 : vector<8x128xf32>
    %cst_11 = arith.constant 2.000000e-01 : f32
    %16 = vector.broadcast %cst_11 : f32 to vector<8x128xf32>
    %17 = arith.mulf %16, %15 : vector<8x128xf32>
    %18 = arith.maximumf %15, %17 : vector<8x128xf32>
    %c0_12 = arith.constant 0 : index
    %c0_13 = arith.constant 0 : index
    %19 = vector.load %arg6[%c0_12, %c0_13] : memref<1x128xf32, #tpu.memory_space<vmem>>, vector<1x128xf32>
    %20 = vector.broadcast %19 : vector<1x128xf32> to vector<8x128xf32>
    %21 = arith.mulf %18, %20 : vector<8x128xf32>
    %cst_14 = arith.constant dense<0.000000e+00> : vector<8xf32>
    %22 = vector.multi_reduction <add>, %21, %cst_14 [1] : vector<8x128xf32> to vector<8xf32>
    %23 = vector.shape_cast %22 : vector<8xf32> to vector<8x1xf32>
    %c0_15 = arith.constant 0 : index
    %c0_16 = arith.constant 0 : index
    %24 = vector.load %arg7[%c0_15, %c0_16] : memref<1x1xf32, #tpu.memory_space<vmem>>, vector<1x1xf32>
    %25 = vector.broadcast %24 : vector<1x1xf32> to vector<8x1xf32>
    %26 = arith.addf %23, %25 : vector<8x1xf32>
    %cst_17 = arith.constant 0.000000e+00 : f32
    %27 = vector.broadcast %cst_17 : f32 to vector<8x1xf32>
    %28 = arith.subf %27, %26 : vector<8x1xf32>
    %29 = math.exp %28 : vector<8x1xf32>
    %cst_18 = arith.constant 1.000000e+00 : f32
    %30 = vector.broadcast %cst_18 : f32 to vector<8x1xf32>
    %31 = arith.addf %30, %29 : vector<8x1xf32>
    %32 = tpu.reciprocal %31 {approx = true} : vector<8x1xf32> -> vector<8x1xf32>
    %c0_19 = arith.constant 0 : index
    %c0_20 = arith.constant 0 : index
    %33 = vector.load %arg8[%c0_19, %c0_20] : memref<8x1xf32, #tpu.memory_space<vmem>>, vector<8x1xf32>
    tpu.vector_store %arg8[%c0_19, %c0_20], %32 {strides = array<i32>} : memref<8x1xf32, #tpu.memory_space<vmem>>, vector<8x1xf32>,
    return
  }
  func.func @transform_0(%arg0: i32) -> (i32, i32) {
    %c0_i32 = arith.constant 0 : i32
    %c0_i32_0 = arith.constant 0 : i32
    return %arg0, %c0_i32 : i32, i32
  }
  func.func @transform_1(%arg0: i32) -> (i32, i32) {
    %c0_i32 = arith.constant 0 : i32
    %c0_i32_0 = arith.constant 0 : i32
    %c0_i32_1 = arith.constant 0 : i32
    return %c0_i32, %c0_i32_0 : i32, i32
  }
  func.func @transform_2(%arg0: i32) -> (i32, i32) {
    %c0_i32 = arith.constant 0 : i32
    %c0_i32_0 = arith.constant 0 : i32
    %c0_i32_1 = arith.constant 0 : i32
    return %c0_i32, %c0_i32_0 : i32, i32
  }
  func.func @transform_3(%arg0: i32) -> (i32, i32) {
    %c0_i32 = arith.constant 0 : i32
    %c0_i32_0 = arith.constant 0 : i32
    %c0_i32_1 = arith.constant 0 : i32
    return %c0_i32, %c0_i32_0 : i32, i32
  }
  func.func @transform_4(%arg0: i32) -> (i32, i32) {
    %c0_i32 = arith.constant 0 : i32
    %c0_i32_0 = arith.constant 0 : i32
    %c0_i32_1 = arith.constant 0 : i32
    return %c0_i32, %c0_i32_0 : i32, i32
  }
  func.func @transform_5(%arg0: i32) -> (i32, i32) {
    %c0_i32 = arith.constant 0 : i32
    %c0_i32_0 = arith.constant 0 : i32
    %c0_i32_1 = arith.constant 0 : i32
    return %c0_i32, %c0_i32_0 : i32, i32
  }
  func.func @transform_6(%arg0: i32) -> (i32, i32) {
    %c0_i32 = arith.constant 0 : i32
    %c0_i32_0 = arith.constant 0 : i32
    %c0_i32_1 = arith.constant 0 : i32
    return %c0_i32, %c0_i32_0 : i32, i32
  }
  func.func @transform_7(%arg0: i32) -> (i32, i32) {
    %c0_i32 = arith.constant 0 : i32
    %c0_i32_0 = arith.constant 0 : i32
    return %arg0, %c0_i32 : i32, i32
  }
}

</mosaic_0001>

<bundles_post_ra>
// kernel: tpu_custom_call.1
= control target key start
LH: loop header
LB: loop body
LE: loop exit
PB: predicated region body
PF: predicated region fallthrough
CT: control target
= control target key end

     0   :  { %s1173_s0 = inlined_call_operand.hbm [shape: f32[8,784], index: 0, kind: input, shape index: {}]   ;;  %s1174_s1 = inlined_call_operand.hbm [shape: bf16[784,128], index: 1, kind: input, shape index: {}]   ;;  %s1175_s2 = inlined_call_operand.vmem [shape: f32[1,128], index: 2, kind: input, shape index: {}]   ;;  %s1176_s3 = inlined_call_operand.hbm [shape: bf16[128,128], index: 3, kind: input, shape index: {}]   ;;  %s1177_s4 = inlined_call_operand.vmem [shape: f32[1,128], index: 4, kind: input, shape index: {}]   ;;  %s1178_s5 = inlined_call_operand.vmem [shape: f32[1,128], index: 5, kind: input, shape index: {}]   ;;  %s1179_s6 = inlined_call_operand.<no memory space> [shape: f32[1,1], index: 6, kind: input, shape index: {}]   ;;  %s1180_s7 = inlined_call_operand.vmem [shape: f32[8,1], index: 7, kind: output, shape index: {}]  }
   0x1   :  { %v12_v0 = vstv %s1179_s6 }
   0x2   :  { %13 = vst [vmem:[#allocation2] sm:$0x1] %v12_v0 }
   0x3   :  { %14 = vsyncpa [#allocation4], 0 }
   0x4   :  { %15 = vsyncpa [#allocation6], 0  ;;  %s1089_s26 = smov [#allocation5]  }
   0x5   :  { %s31_s27 = sshll.u32 %s1089_s26, 4  ;;  %s32_s27 = int_to_ptr.vmem [resolvable:$true] %s31_s27 }
   0x6   :  { %s1033_s28 = scalar_lea.vmem %s32_s27, 6272  ;;  %p1038_p1 = scmp.lt.s32.totalorder %s32_s27, %s32_s27 }
   0x7   :  { %p1034_p0 = scmp.ne.s32.totalorder %s32_s27, %s1033_s28  ;;  %p1039_p2 = scmp.lt.s32.totalorder %s1033_s28, %s1033_s28 }
   0x9   :  { %p1040_p3 = por %p1039_p2, %p1038_p1 }
   0xb   :  { %p1041_p4 = pnand %p1040_p3, %p1034_p0 }
   0xd   :  { %1044 = shalt.err (!%p1041_p4)
}
   0xe   :  { %s1090_s29 = smov 64   ;;  %s1091_s30 = smov 4  }
   0xf   :  { %37 = dma.hbm_to_vmem [thread:$0]  %s1174_s1, 6272, %s32_s27, [#allocation6], %s1090_s29, %s1090_s29, %s1091_s30  }
  0x10   :  { %s1092_s6 = smov [#allocation3]   ;;  %s1093_s11 = smov [#allocation7]  }
  0x11   :  { %s22_s10 = sshll.u32 %s1092_s6, 4  ;;  %s45_s12 = sshll.u32 %s1093_s11, 4  ;;  %s23_s10 = int_to_ptr.vmem [resolvable:$true] %s22_s10  ;;  %s46_s12 = int_to_ptr.vmem [resolvable:$true] %s45_s12 }
  0x12   :  { %s1053_s13 = scalar_lea.vmem %s23_s10, 896  ;;  %p1058_p6 = scmp.lt.s32.totalorder %s23_s10, %s23_s10 }
  0x13   :  { %p1054_p5 = scmp.ne.s32.totalorder %s23_s10, %s1053_s13  ;;  %p1059_p7 = scmp.lt.s32.totalorder %s1053_s13, %s1053_s13 }
  0x15   :  { %p1060_p8 = por %p1059_p7, %p1058_p6 }
  0x17   :  { %p1061_p9 = pnand %p1060_p8, %p1054_p5 }
  0x19   :  { %1064 = shalt.err (!%p1061_p9)
}
  0x1a   :  { %25 = dma.hbm_to_vmem [thread:$0]  %s1173_s0, 896, %s23_s10, [#allocation4]  }
  0x1b   :  { %s1073_s16 = scalar_lea.vmem %s46_s12, 1024  ;;  %p1078_p11 = scmp.lt.s32.totalorder %s46_s12, %s46_s12 }
  0x1c   :  { %p1074_p10 = scmp.ne.s32.totalorder %s46_s12, %s1073_s16  ;;  %p1079_p12 = scmp.lt.s32.totalorder %s1073_s16, %s1073_s16 }
  0x1e   :  { %p1080_p13 = por %p1079_p12, %p1078_p11 }
  0x20   :  { %p1081_p0 = pnand %p1080_p13, %p1074_p10 }
  0x22   :  { %1084 = shalt.err (!%p1081_p0)
}
  0x23   :  { %51 = dma.hbm_to_vmem [thread:$0]  %s1176_s3, 1024, %s46_s12, [#allocation6], %s1090_s29, %s1090_s29, %s1091_s30  }
  0x24   :  { %1085 = dma.done.wait [#allocation4], 896  }
  0x25   :  { %1086 = vsyncadd [#allocation4], 4294966400 }
  0x26   :  { %1087 = dma.done.wait [#allocation6], 7296  }
  0x27   :  { %1088 = vsyncadd [#allocation6], 4294960000  ;;  %v964_v1 = vld [vmem:[#allocation5 + $0x78] sm:$0xff]   ;;  %v968_v5 = vld [vmem:[#allocation5 + $0x70] sm:$0xff]   ;;  %v1094_v45 = vmov 0.0   ;;  %vm1095_vm0 = vmmov 0  }
  0x28   :  { %v965_v2 = vld [vmem:[#allocation5 + $0x38] sm:$0xff]   ;;  %854 = vmatprep.subr.bf16.mxu0 %v964_v1  ;;  %v969_v6 = vld [vmem:[#allocation5 + $0x30] sm:$0xff]   ;;  %v972_v9 = vld [vmem:[#allocation5 + $0x68] sm:$0xff]   ;;  %vm481_vm1 = vcmask 130048   ;;  %vm784_vm2 = vcmask 7168  }
  0x29   :  { %v966_v3 = vld [vmem:[#allocation5 + $0xf8] sm:$0xff]   ;;  %855 = vmatpush3.bf16.msra.mxu0 %v965_v2  ;;  %v970_v7 = vld [vmem:[#allocation5 + $0xf0] sm:$0xff]   ;;  %v973_v10 = vld [vmem:[#allocation5 + $0x28] sm:$0xff]  }
  0x2a   :  { %v967_v4 = vld [vmem:[#allocation5 + $0xb8] sm:$0xff]   ;;  %876 = vmatprep.subr.bf16.mxu1 %v966_v3  ;;  %856 = vmatprep.subr.bf16.mxu0 %v968_v5  ;;  %v971_v8 = vld [vmem:[#allocation5 + $0xb0] sm:$0xff]   ;;  %v974_v11 = vld [vmem:[#allocation5 + $0xe8] sm:$0xff]  }
  0x2b   :  { %877 = vmatpush3.bf16.msra.mxu1 %v967_v4  ;;  %v975_v12 = vld [vmem:[#allocation5 + $0xa8] sm:$0xff]   ;;  %v976_v13 = vld [vmem:[#allocation5 + $0x60] sm:$0xff]   ;;  %v980_v17 = vld [vmem:[#allocation5 + $0x58] sm:$0xff]  }
  0x2c   :  { %878 = vmatprep.subr.bf16.mxu1 %v970_v7  ;;  %v977_v14 = vld [vmem:[#allocation5 + $0x20] sm:$0xff]   ;;  %v981_v18 = vld [vmem:[#allocation5 + $0x18] sm:$0xff]   ;;  %v984_v21 = vld [vmem:[#allocation5 + $0x50] sm:$0xff]  }
  0x2d   :  { %857 = vmatpush3.bf16.msra.mxu0 %v969_v6  ;;  %v978_v15 = vld [vmem:[#allocation5 + $0xe0] sm:$0xff]   ;;  %v982_v19 = vld [vmem:[#allocation5 + $0xd8] sm:$0xff]   ;;  %v985_v22 = vld [vmem:[#allocation5 + $0x10] sm:$0xff]  }
  0x2e   :  { %858 = vmatprep.subr.bf16.mxu0 %v972_v9  ;;  %v979_v16 = vld [vmem:[#allocation5 + $0xa0] sm:$0xff]   ;;  %v983_v20 = vld [vmem:[#allocation5 + $0x98] sm:$0xff]   ;;  %v986_v23 = vld [vmem:[#allocation5 + $0xd0] sm:$0xff]  }
  0x2f   :  { %879 = vmatpush3.bf16.msra.mxu1 %v971_v8  ;;  %v987_v24 = vld [vmem:[#allocation5 + $0x90] sm:$0xff]   ;;  %v988_v25 = vld [vmem:[#allocation5 + $0x48] sm:$0xff]   ;;  %v992_v29 = vld [vmem:[#allocation5 + $0x40] sm:$0xff]  }
  0x30   :  { %880 = vmatprep.subr.bf16.mxu1 %v974_v11  ;;  %v989_v26 = vld [vmem:[#allocation5 + $0x8] sm:$0xff]   ;;  %v993_v30 = vld [vmem:[#allocation5] sm:$0xff]   ;;  %v69_v32 = vld [vmem:[#allocation3 + $0x8] sm:$0xff] }
  0x31   :  { %859 = vmatpush3.bf16.msra.mxu0 %v973_v10  ;;  %v990_v27 = vld [vmem:[#allocation5 + $0xc8] sm:$0xff]   ;;  %v994_v31 = vld [vmem:[#allocation5 + $0xc0] sm:$0xff]   ;;  %v76_v33 = vpack.c.bf16 %v69_v32, %v69_v32  ;;  %v996_v37 = vld [vmem:[#allocation5 + $0x178] sm:$0xff]  }
  0x32   :  { %860 = vmatprep.subr.bf16.mxu0 %v976_v13  ;;  %v991_v28 = vld [vmem:[#allocation5 + $0x88] sm:$0xff]   ;;  %v995_v34 = vld [vmem:[#allocation5 + $0x80] sm:$0xff]   ;;  %v997_v40 = vld [vmem:[#allocation5 + $0x138] sm:$0xff]  }
  0x33   :  { %881 = vmatpush3.bf16.msra.mxu1 %v975_v12  ;;  %v68_v35 = vld [vmem:[#allocation3] sm:$0xff]  ;;  %v71_v38 = vld [vmem:[#allocation3 + $0x18] sm:$0xff]  ;;  %517 = vmatprep.mubr.bf16.mxu0 %v76_v33  ;;  %v70_v41 = vld [vmem:[#allocation3 + $0x10] sm:$0xff] }
  0x34   :  { %882 = vmatprep.subr.bf16.mxu1 %v978_v15  ;;  %v75_v36 = vpack.c.bf16 %v68_v35, %v68_v35  ;;  %v78_v39 = vpack.c.bf16 %v71_v38, %v71_v38  ;;  %v77_v42 = vpack.c.bf16 %v70_v41, %v70_v41  ;;  %v998_v43 = vld [vmem:[#allocation5 + $0x170] sm:$0xff]   ;;  %v1000_v46 = vld [vmem:[#allocation5 + $0x168] sm:$0xff]   ;;  %v1002_v48 = vld [vmem:[#allocation5 + $0x160] sm:$0xff]  }
  0x35   :  { %861 = vmatpush3.bf16.msra.mxu0 %v977_v14  ;;  %v999_v44 = vld [vmem:[#allocation5 + $0x130] sm:$0xff]   ;;  %v1001_v47 = vld [vmem:[#allocation5 + $0x128] sm:$0xff]   ;;  %v1003_v49 = vld [vmem:[#allocation5 + $0x120] sm:$0xff]  }
  0x36   :  { %862 = vmatprep.subr.bf16.mxu0 %v980_v17  ;;  %557 = vmatprep.mubr.bf16.mxu1 %v78_v39  ;;  %v1004_v50 = vld [vmem:[#allocation5 + $0x158] sm:$0xff]   ;;  %v1006_v52 = vld [vmem:[#allocation5 + $0x150] sm:$0xff]   ;;  %v1012_v54 = vld [vmem:[#allocation5 + $0x180] sm:$0xff]  }
  0x37   :  { %883 = vmatpush3.bf16.msra.mxu1 %v979_v16  ;;  %v1005_v51 = vld [vmem:[#allocation5 + $0x118] sm:$0xff]   ;;  %v1007_v53 = vld [vmem:[#allocation5 + $0x110] sm:$0xff]   ;;  %v1008_v56 = vld [vmem:[#allocation5 + $0x148] sm:$0xff]  }
  0x38   :  { %884 = vmatprep.subr.bf16.mxu1 %v982_v19  ;;  %v73_v55 = vld [vmem:[#allocation3 + $0x28] sm:$0xff]  ;;  %v74_v58 = vld [vmem:[#allocation3 + $0x30] sm:$0xff]  ;;  %v1009_v60 = vld [vmem:[#allocation5 + $0x108] sm:$0xff]  }
  0x39   :  { %863 = vmatpush3.bf16.msra.mxu0 %v981_v18  ;;  %v80_v57 = vpack.c.bf16 %v73_v55, %v73_v55  ;;  %v81_v59 = vpack.c.bf16 %v74_v58, %v74_v58  ;;  %v1010_v61 = vld [vmem:[#allocation5 + $0x140] sm:$0xff]   ;;  %v72_v63 = vld [vmem:[#allocation3 + $0x20] sm:$0xff]  ;;  %v1014_v2 = vld [vmem:[#allocation7 + $0x30] sm:$0xff]  }
  0x3a   :  { %864 = vmatprep.subr.bf16.mxu0 %v984_v21  ;;  %v1011_v62 = vld [vmem:[#allocation5 + $0x100] sm:$0xff]   ;;  %v79_v0 = vpack.c.bf16 %v72_v63, %v72_v63  ;;  %v1015_v3 = vld [vmem:[#allocation7 + $0x28] sm:$0xff]   ;;  %v1016_v4 = vld [vmem:[#allocation7 + $0x20] sm:$0xff]  }
  0x3b   :  { %885 = vmatpush3.bf16.msra.mxu1 %v983_v20  ;;  %v1013_v1 = vld [vmem:[#allocation7 + $0x38] sm:$0xff]   ;;  %v1018_v6 = vld [vmem:[#allocation7 + $0x10] sm:$0xff]   ;;  %v1019_v7 = vld [vmem:[#allocation7 + $0x8] sm:$0xff]  }
  0x3c   :  { %886 = vmatprep.subr.bf16.mxu1 %v986_v23  ;;  %v1017_v5 = vld [vmem:[#allocation7 + $0x18] sm:$0xff]   ;;  %v1020_v8 = vld [vmem:[#allocation7] sm:$0xff]  }
  0x3d   :  { %865 = vmatpush3.bf16.msra.mxu0 %v985_v22  ;;  %v792_v22 = vld [vmem:[%s1175_s2] ss:$0 sm:$0xff] }
  0x3e   :  { %866 = vmatprep.subr.bf16.mxu0 %v988_v25 }
  0x3f   :  { %887 = vmatpush3.bf16.msra.mxu1 %v987_v24 }
  0x40   :  { %888 = vmatprep.subr.bf16.mxu1 %v990_v27 }
  0x41   :  { %867 = vmatpush3.bf16.msra.mxu0 %v989_v26 }
  0x42   :  { %868 = vmatprep.subr.bf16.mxu0 %v992_v29 }
  0x43   :  { %889 = vmatpush3.bf16.msra.mxu1 %v991_v28 }
  0x44   :  { %890 = vmatprep.subr.bf16.mxu1 %v994_v31 }
  0x45   :  { %869 = vmatpush3.bf16.msra.mxu0 %v993_v30 }
  0x46   :  { %898 = vmatprep.subr.bf16.mxu0 %v996_v37 }
  0x47   :  { %891 = vmatpush3.bf16.msra.mxu1 %v995_v34 }
  0x48   :  { %518 = vmatmul.mubr.bf16.vlgmr.msra.gmra.mxu0 %v75_v36  ;;  %931 = vmatprep.subr.bf16.mxu1 %v1094_v45  ;;  %v843_v36 = vld [vmem:[%s1177_s4] ss:$0 sm:$0xff] }
  0x49   :  { %899 = vmatpush3.bf16.msra.mxu0 %v997_v40  ;;  %597 = vmatprep.mubr.bf16.mxu0 %v80_v57 }
  0x4a   :  { %558 = vmatmul.mubr.bf16.vlgmr.msra.gmra.mxu1 %v77_v42  ;;  %900 = vmatprep.subr.bf16.mxu0 %v998_v43  ;;  %v852_v42 = vld [vmem:[%s1178_s5] ss:$0 sm:$0xff] }
  0x4b   :  { %933 = vmatprep.mubr.msk.bf16.mxu1 %vm1095_vm0, %v1094_v45  ;;  %932 = vmatpush3.bf16.msra.mxu1 %v1012_v54 }
  0x4c   :  { %937 = vmatprep.subr.bf16.mxu1 %v1094_v45 }
  0x4d   :  { %901 = vmatpush3.bf16.msra.mxu0 %v999_v44 }
  0x4e   :  { %902 = vmatprep.subr.bf16.mxu0 %v1000_v46  ;;  %v853_v46 = vld [vmem:[#allocation2] ss:$0 sm:$0xff] }
  0x51   :  { %903 = vmatpush3.bf16.msra.mxu0 %v1001_v47 }
  0x52   :  { %904 = vmatprep.subr.bf16.mxu0 %v1002_v48  ;;  %934 = vmatmul.mubr.msk.bf16.vlgmr.msra.gmra.mxu1 %vm481_vm1, %v81_v59 }
  0x53   :  { %953 = vmatprep.mubr.msk.bf16.mxu1 %vm1095_vm0, %v1094_v45  ;;  %938 = vmatpush3.bf16.msra.mxu1 %v1013_v1 }
  0x54   :  { %939 = vmatprep.subr.bf16.mxu1 %v1094_v45 }
  0x55   :  { %905 = vmatpush3.bf16.msra.mxu0 %v1003_v49 }
  0x56   :  { %906 = vmatprep.subr.bf16.mxu0 %v1004_v50 }
  0x57   :  { %940 = vmatpush3.bf16.msra.mxu1 %v1014_v2 }
  0x58   :  { %941 = vmatprep.subr.bf16.mxu1 %v1094_v45 }
  0x59   :  { %907 = vmatpush3.bf16.msra.mxu0 %v1005_v51 }
  0x5a   :  { %908 = vmatprep.subr.bf16.mxu0 %v1006_v52 }
  0x5b   :  { %942 = vmatpush3.bf16.msra.mxu1 %v1015_v3 }
  0x5c   :  { %943 = vmatprep.subr.bf16.mxu1 %v1094_v45 }
  0x5d   :  { %909 = vmatpush3.bf16.msra.mxu0 %v1007_v53 }
  0x5e   :  { %910 = vmatprep.subr.bf16.mxu0 %v1008_v56 }
  0x5f   :  { %944 = vmatpush3.bf16.msra.mxu1 %v1016_v4 }
  0x60   :  { %945 = vmatprep.subr.bf16.mxu1 %v1094_v45 }
  0x61   :  { %911 = vmatpush3.bf16.msra.mxu0 %v1009_v60 }
  0x62   :  { %912 = vmatprep.subr.bf16.mxu0 %v1010_v61 }
  0x63   :  { %946 = vmatpush3.bf16.msra.mxu1 %v1017_v5 }
  0x64   :  { %947 = vmatprep.subr.bf16.mxu1 %v1094_v45 }
  0x65   :  { %913 = vmatpush3.bf16.msra.mxu0 %v1011_v62 }
  0x67   :  { %948 = vmatpush3.bf16.msra.mxu1 %v1018_v6 }
  0x68   :  { %598 = vmatmul.mubr.bf16.vlgmr.msra.gmra.mxu0 %v79_v0  ;;  %949 = vmatprep.subr.bf16.mxu1 %v1094_v45 }
  0x6b   :  { %950 = vmatpush3.bf16.msra.mxu1 %v1019_v7 }
  0x6c   :  { %951 = vmatprep.subr.bf16.mxu1 %v1094_v45 }
  0x6f   :  { %952 = vmatpush3.bf16.msra.mxu1 %v1020_v8 }
 0x108   :  { %v870_v9 = vpop.f32.mrf.mxu0 }
 0x10a   :  { %v871_v10 = vpop.f32.mrf.mxu0  ;;  %v892_v11 = vpop.f32.mrf.mxu1 }
 0x10b   :  { %v872_v21 = vadd.f32 %v871_v10, %v870_v9 }
 0x10c   :  { %v873_v12 = vpop.f32.mrf.mxu0  ;;  %v893_v13 = vpop.f32.mrf.mxu1 }
 0x10d   :  { %v520_v23 = vadd.f32 %v872_v21, %v792_v22  ;;  %v894_v24 = vadd.f32 %v893_v13, %v892_v11 }
 0x10e   :  { %v874_v14 = vpop.f32.mrf.mxu0  ;;  %v895_v15 = vpop.f32.mrf.mxu1 }
 0x10f   :  { %v560_v27 = vadd.f32 %v894_v24, %v520_v23 }
 0x110   :  { %v896_v16 = vpop.f32.mrf.mxu1 }
 0x112   :  { %v639_v17 = vpop.f32.mrf.mxu1 }
 0x114   :  { %v935_v18 = vpop.f32.mrf.mxu1 }
 0x116   :  { %v642_v19 = vpop.f32.mrf.mxu1 }
 0x118   :  { %v936_v20 = vpop.f32.mrf.mxu1 }
 0x128   :  { %v914_v25 = vpop.f32.mrf.mxu0 }
 0x12a   :  { %v915_v26 = vpop.f32.mrf.mxu0 }
 0x12b   :  { %v916_v28 = vadd.f32 %v915_v26, %v914_v25 }
 0x12c   :  { %v917_v29 = vpop.f32.mrf.mxu0 }
 0x12d   :  { %v600_v30 = vadd.f32 %v916_v28, %v560_v27 }
 0x12e   :  { %v918_v31 = vpop.f32.mrf.mxu0 }
 0x12f   :  { %v640_v32 = vadd.f32 %v639_v17, %v600_v30 }
 0x131   :  { %v645_v33 = vmul.f32 0.2, %v640_v32 }
 0x133   :  { %v646_v34 = vmax.f32 %v640_v32, %v645_v33 }
 0x135   :  { %v647_v35 = vpack.c.bf16 %v646_v34, %v646_v34 }
 0x137   :  { %954 = vmatmul.mubr.bf16.vlgmr.msra.gmra.mxu1 %v647_v35 }
 0x1f7   :  { %v753_v37 = vpop.f32.mrf.mxu1 }
 0x1f8   :  { %v754_v38 = vadd.f32 %v843_v36, %v753_v37 }
 0x1f9   :  { %v955_v39 = vpop.f32.mrf.mxu1 }
 0x1fa   :  { %v759_v40 = vmul.f32 0.2, %v754_v38 }
 0x1fb   :  { %v756_v41 = vpop.f32.mrf.mxu1 }
 0x1fc   :  { %v760_v43 = vmax.f32 %v754_v38, %v759_v40 }
 0x1fd   :  { %v956_v44 = vpop.f32.mrf.mxu1 }
 0x1fe   :  { %v768_v45 = vmul.f32 %v852_v42, %v760_v43 }
 0x200   :  { %769 = vadd.xlane.f32.xlu0 %v768_v45 }
 0x289   :  { %v770_v47 = vpop.xlane.xlu0 %769 }
 0x28a   :  { %v778_v48 = vadd.f32 %v853_v46, %v770_v47 }
 0x28c   :  { %v779_v49 = vsub.f32 0.0, %v778_v48 }
 0x28e   :  { %v780_v50 = vmul.f32 1.442695, %v779_v49 }
 0x290   :  { %1021 = vpow2.f32 %v780_v50 }
 0x29d   :  { %v1022_v51 = vpop.eup %1021 }
 0x29e   :  { %v782_v52 = vadd.f32 1.0, %v1022_v51 }
 0x2a0   :  { %1023 = vrcp.f32 %v782_v52 }
 0x2ad   :  { %v1024_v53 = vpop.eup %1023 }
 0x2ae   :  { %785 = vst.msk [vmem:[%s1180_s7] sm:$0xff] %vm784_vm2, %v1024_v53 }
 0x2af   :  { %790 = vsyncpa [#allocation4], 1 }
 0x2b0   :  { %791 = vsyncpa [#allocation6], 1 }

</bundles_post_ra>
